<compile_context>
chip_gen: v6e
topology: v6e:2x2x1
jax: 0.10.0
libtpu: 0.0.40
codegen_flags: <defaults>
</compile_context>

<pallas_src>
import jax
import jax.numpy as jnp
from jax.experimental import pallas as pl
from jax.experimental.pallas import tpu as pltpu


# ----------------------------- configuration --------------------------------
# Mirrors the argparse defaults implied by the module:
#   args.factor_num = 8, args.layers = [64, 32, 16, 8]  (dropout unused in forward)
FACTOR_NUM_MF = 8
LAYERS = [64, 32, 16, 8]
FACTOR_NUM_MLP = LAYERS[0] // 2  # 32
NUM_USERS = 32
NUM_ITEMS = 64
BATCH = 16

L1, L2, L3 = LAYERS[1], LAYERS[2], LAYERS[3]  # 32, 16, 8
E_COLS = L1 + FACTOR_NUM_MF                   # 40 = [folded Linear1 | mf embedding]

# Row layout of the packed parameter slab (width = L2 = 16 lanes).
P_COLS = L2
ROW_W2 = 0                   # rows  0..31 : w2  (32, 16)
ROW_W3 = L1                  # rows 32..47 : w3  (16,  8) in cols 0..7
ROW_B2 = L1 + L2             # row  48     : b2  (16,)
ROW_B3 = ROW_B2 + 1          # row  49     : b3  ( 8,)   in cols 0..7
ROW_WOH = ROW_B3 + 1         # row  50     : wo[:8]  (MLP half of affine_output)
ROW_WOMF = ROW_WOH + 1       # row  51     : wo[8:]  (MF half of affine_output)
ROW_BO = ROW_WOMF + 1        # row  52     : bo scalar in col 0
P_ROWS = ((ROW_BO + 1 + 7) // 8) * 8          # 56 (sublane-aligned)


# ------------------------------- kernel --------------------------------------
def neumf_kernel(idx_ref, emb_ref, par_ref, out_ref):
    TB = idx_ref.shape[0]
    n_rows = emb_ref.shape[0]          # num_users + num_items

    idx = idx_ref[...]                 # (TB, 2) int32: [user_row, item_row+num_users]
    uidx = idx[:, 0:1]
    iidx = idx[:, 1:2]

    # Embedding/Linear1 gather as a single one-hot matmul (exact for int indices).
    row_ids = jax.lax.broadcasted_iota(jnp.int32, (TB, n_rows), 1)
    u_onehot = (row_ids == uidx).astype(jnp.float32)   # (TB, n_rows)
    i_onehot = (row_ids == iidx).astype(jnp.float32)   # (TB, n_rows)
    onehot = jnp.concatenate([u_onehot, i_onehot], axis=0)  # (2*TB, n_rows) sublane concat

    E = emb_ref[...]                                   # (n_rows, 40)
    packed = jnp.dot(onehot, E, preferred_element_type=jnp.float32)  # (2*TB, 40)
    u_pack = packed[:TB, :]                            # sublane-aligned static slices
    i_pack = packed[TB:, :]

    # Linear1 is pre-folded into the tables (b1 folded into the user rows).
    h = jnp.maximum(u_pack[:, :L1] + i_pack[:, :L1], 0.0)       # (TB, 32)
    mf = u_pack[:, L1:] * i_pack[:, L1:]                        # (TB, 8)

    # Packed MLP parameters (single VMEM slab, static slices = free views).
    P = par_ref[...]                                            # (56, 16)
    w2 = P[ROW_W2:ROW_W2 + L1, :]                               # (32, 16)
    w3 = P[ROW_W3:ROW_W3 + L2, :L3]                             # (16, 8)
    b2 = P[ROW_B2:ROW_B2 + 1, :]                                # (1, 16)
    b3 = P[ROW_B3:ROW_B3 + 1, :L3]                              # (1, 8)
    wo_h = P[ROW_WOH:ROW_WOH + 1, :L3]                          # (1, 8)
    wo_mf = P[ROW_WOMF:ROW_WOMF + 1, :FACTOR_NUM_MF]            # (1, 8)
    bo = P[ROW_BO:ROW_BO + 1, 0:1]                              # (1, 1)

    h = jnp.maximum(jnp.dot(h, w2, preferred_element_type=jnp.float32) + b2, 0.0)  # (TB, 16)
    h = jnp.maximum(jnp.dot(h, w3, preferred_element_type=jnp.float32) + b3, 0.0)  # (TB, 8)

    # Final affine (out_features=1) as a VPU multiply + lane reduction instead of
    # a wasteful N=1 MXU matmul; no lane-dim concats needed.
    logits = (jnp.sum(h * wo_h, axis=-1, keepdims=True)
              + jnp.sum(mf * wo_mf, axis=-1, keepdims=True)
              + bo)                                             # (TB, 1)
    out_ref[...] = jax.nn.sigmoid(logits)


# --------------------------- parameter packing --------------------------------
def pack_params(params):
    """Fold embeddings with Linear1 and pack all small MLP params into one slab."""
    w1 = params["w1"]                       # (64, 32), stored as (in, out)
    b1 = params["b1"].reshape(1, L1)
    w1_u = w1[:FACTOR_NUM_MLP, :]           # user half of Linear1
    w1_i = w1[FACTOR_NUM_MLP:, :]           # item half of Linear1

    # user rows: [emb_user_mlp @ w1_u + b1 | emb_user_mf]   -> (num_users, 40)
    # item rows: [emb_item_mlp @ w1_i      | emb_item_mf]   -> (num_items, 40)
    user_rows = jnp.concatenate(
        [params["emb_user_mlp"] @ w1_u + b1, params["emb_user_mf"]], axis=-1)
    item_rows = jnp.concatenate(
        [params["emb_item_mlp"] @ w1_i, params["emb_item_mf"]], axis=-1)
    emb_table = jnp.concatenate([user_rows, item_rows], axis=0).astype(jnp.float32)

    wo = params["wo"].reshape(L3 + FACTOR_NUM_MF)               # (16,)
    P = jnp.zeros((P_ROWS, P_COLS), jnp.float32)
    P = P.at[ROW_W2:ROW_W2 + L1, :L2].set(params["w2"])
    P = P.at[ROW_W3:ROW_W3 + L2, :L3].set(params["w3"])
    P = P.at[ROW_B2, :L2].set(params["b2"].reshape(L2))
    P = P.at[ROW_B3, :L3].set(params["b3"].reshape(L3))
    P = P.at[ROW_WOH, :L3].set(wo[:L3])
    P = P.at[ROW_WOMF, :FACTOR_NUM_MF].set(wo[L3:])
    P = P.at[ROW_BO, 0].set(params["bo"].reshape(()))
    return emb_table, P


# ------------------------------ wrapper ---------------------------------------
@jax.jit
def neumf_forward(user_indices, item_indices, params):
    B = user_indices.shape[0]
    num_users = params["emb_user_mlp"].shape[0]

    emb_table, par_table = pack_params(params)
    n_rows = emb_table.shape[0]

    # Single (B, 2) int32 index array; item rows pre-offset into the stacked table.
    uidx = user_indices.astype(jnp.int32)
    iidx = item_indices.astype(jnp.int32) + num_users
    idx = jnp.stack([uidx, iidx], axis=-1)                      # (B, 2)

    # Pad batch to a sublane multiple (8) so block shapes are always legal.
    B_pad = ((B + 7) // 8) * 8
    if B_pad != B:
        idx = jnp.pad(idx, ((0, B_pad - B), (0, 0)))

    # Largest batch tile <= 256 that divides the padded batch (>= 8 always works).
    TB = min(B_pad, 256)
    while B_pad % TB:
        TB -= 8
    grid = (B_pad // TB,)

    out = pl.pallas_call(
        neumf_kernel,
        out_shape=jax.ShapeDtypeStruct((B_pad, 1), jnp.float32),
        grid_spec=pltpu.PrefetchScalarGridSpec(
            num_scalar_prefetch=0,
            grid=grid,
            in_specs=[
                pl.BlockSpec((TB, 2), lambda i: (i, 0)),           # indices (per tile)
                pl.BlockSpec((n_rows, E_COLS), lambda i: (0, 0)),  # fused emb/L1 table
                pl.BlockSpec((P_ROWS, P_COLS), lambda i: (0, 0)),  # packed MLP params
            ],
            out_specs=pl.BlockSpec((TB, 1), lambda i: (i, 0)),
        ),
        compiler_params=pltpu.CompilerParams(
            dimension_semantics=("parallel",)),
    )(idx, emb_table, par_table)
    return out.reshape(B_pad)[:B]  # rating.squeeze()


# --------------------------- parameter init ------------------------------------
def init_params(key):
    ks = jax.random.split(key, 10)

    def xavier(k, fan_in, fan_out):
        limit = (6.0 / (fan_in + fan_out)) ** 0.5
        # stored as (in, out); computation is x @ W  (== PyTorch x @ W.T with W=(out,in))
        return jax.random.uniform(k, (fan_in, fan_out), jnp.float32, -limit, limit)

    params = {
        "emb_user_mlp": 0.01 * jax.random.normal(ks[0], (NUM_USERS, FACTOR_NUM_MLP), jnp.float32),
        "emb_item_mlp": 0.01 * jax.random.normal(ks[1], (NUM_ITEMS, FACTOR_NUM_MLP), jnp.float32),
        "emb_user_mf": 0.01 * jax.random.normal(ks[2], (NUM_USERS, FACTOR_NUM_MF), jnp.float32),
        "emb_item_mf": 0.01 * jax.random.normal(ks[3], (NUM_ITEMS, FACTOR_NUM_MF), jnp.float32),
        "w1": xavier(ks[4], LAYERS[0], LAYERS[1]),
        "b1": jnp.zeros((1, LAYERS[1]), jnp.float32),
        "w2": xavier(ks[5], LAYERS[1], LAYERS[2]),
        "b2": jnp.zeros((1, LAYERS[2]), jnp.float32),
        "w3": xavier(ks[6], LAYERS[2], LAYERS[3]),
        "b3": jnp.zeros((1, LAYERS[3]), jnp.float32),
        "wo": xavier(ks[7], LAYERS[-1] + FACTOR_NUM_MF, 1),
        "bo": jnp.zeros((1, 1), jnp.float32),
    }
    return params


# ------------------------- pure-JAX reference -----------------------------------
def neumf_reference(user_indices, item_indices, params):
    u_mlp = params["emb_user_mlp"][user_indices]
    i_mlp = params["emb_item_mlp"][item_indices]
    u_mf = params["emb_user_mf"][user_indices]
    i_mf = params["emb_item_mf"][item_indices]
    mlp = jnp.concatenate([u_mlp, i_mlp], axis=-1)
    mf = u_mf * i_mf
    h = jax.nn.relu(mlp @ params["w1"] + params["b1"])
    h = jax.nn.relu(h @ params["w2"] + params["b2"])
    h = jax.nn.relu(h @ params["w3"] + params["b3"])
    vec = jnp.concatenate([h, mf], axis=-1)
    logits = vec @ params["wo"] + params["bo"]
    return jax.nn.sigmoid(logits).reshape(-1)


# -------------------------------- main ------------------------------------------
if __name__ == "__main__":
    key = jax.random.PRNGKey(0)
    k_param, k_user, k_item = jax.random.split(key, 3)

    params = init_params(k_param)
    user_indices = jax.random.randint(k_user, (BATCH,), 0, NUM_USERS, dtype=jnp.int32)
    item_indices = jax.random.randint(k_item, (BATCH,), 0, NUM_ITEMS, dtype=jnp.int32)

    rating = neumf_forward(user_indices, item_indices, params)
    rating = jax.block_until_ready(rating)

    ref = neumf_reference(user_indices, item_indices, params)
    assert rating.shape == (BATCH,), rating.shape
    assert jnp.allclose(rating, ref, atol=1e-5, rtol=1e-5), (rating, ref)

    print("KERNEL_OK")
</pallas_src>

<mosaic_0001>
module attributes {stable_mosaic.version = 11 : i64} {
  func.func @neumf_kernel(%arg0: i32, %arg1: memref<16x2xi32, #tpu.memory_space<vmem>>, %arg2: memref<96x40xf32, #tpu.memory_space<vmem>>, %arg3: memref<56x16xf32, #tpu.memory_space<vmem>>, %arg4: memref<16x1xf32, #tpu.memory_space<vmem>>) attributes {dimension_semantics = [#tpu.dimension_semantics<parallel>], iteration_bounds = array<i64: 1>, scalar_prefetch = 0 : i64, scratch_operands = 0 : i64, tpu.core_type = #tpu.core_type<tc>, window_params = [{transform_indices = @transform_0, window_bounds = array<i64: 16, 2>}, {pipeline_mode = #tpu.pipeline_mode<synchronous>, transform_indices = @transform_1, window_bounds = array<i64: 96, 40>}, {pipeline_mode = #tpu.pipeline_mode<synchronous>, transform_indices = @transform_2, window_bounds = array<i64: 56, 16>}, {transform_indices = @transform_3, window_bounds = array<i64: 16, 1>}]} {
    %c0 = arith.constant 0 : index
    %c0_0 = arith.constant 0 : index
    %0 = vector.load %arg1[%c0, %c0_0] : memref<16x2xi32, #tpu.memory_space<vmem>>, vector<16x2xi32>
    %1 = vector.extract_strided_slice %0 {offsets = [0, 0], sizes = [16, 1], strides = [1, 1]} : vector<16x2xi32> to vector<16x1xi32>
    %2 = vector.extract_strided_slice %0 {offsets = [0, 1], sizes = [16, 1], strides = [1, 1]} : vector<16x2xi32> to vector<16x1xi32>
    %3 = tpu.iota {dimensions = array<i32: 1>} : vector<16x96xi32>
    %4 = vector.broadcast %1 : vector<16x1xi32> to vector<16x96xi32>
    %5 = arith.cmpi eq, %3, %4 : vector<16x96xi32>
    %6 = arith.extui %5 : vector<16x96xi1> to vector<16x96xi32>
    %7 = arith.sitofp %6 : vector<16x96xi32> to vector<16x96xf32>
    %8 = vector.broadcast %2 : vector<16x1xi32> to vector<16x96xi32>
    %9 = arith.cmpi eq, %3, %8 : vector<16x96xi32>
    %10 = arith.extui %9 : vector<16x96xi1> to vector<16x96xi32>
    %11 = arith.sitofp %10 : vector<16x96xi32> to vector<16x96xf32>
    %12 = tpu.concatenate %7, %11 in 0 : vector<16x96xf32>, vector<16x96xf32> -> vector<32x96xf32>
    %c0_1 = arith.constant 0 : index
    %c0_2 = arith.constant 0 : index
    %13 = vector.load %arg2[%c0_1, %c0_2] : memref<96x40xf32, #tpu.memory_space<vmem>>, vector<96x40xf32>
    %cst = arith.constant dense<0.000000e+00> : vector<32x40xf32>
    %14 = tpu.matmul %12, %13, %cst {dimension_numbers = #tpu.dot_dimension_numbers<[1], [0], [0], [1], [0, 0, 1, 1], [], []>} : vector<32x96xf32>, vector<96x40xf32>, vector<32x40xf32> -> vector<32x40xf32>
    %15 = vector.extract_strided_slice %14 {offsets = [0, 0], sizes = [16, 40], strides = [1, 1]} : vector<32x40xf32> to vector<16x40xf32>
    %16 = vector.extract_strided_slice %14 {offsets = [16, 0], sizes = [16, 40], strides = [1, 1]} : vector<32x40xf32> to vector<16x40xf32>
    %17 = vector.extract_strided_slice %15 {offsets = [0, 0], sizes = [16, 32], strides = [1, 1]} : vector<16x40xf32> to vector<16x32xf32>
    %18 = vector.extract_strided_slice %16 {offsets = [0, 0], sizes = [16, 32], strides = [1, 1]} : vector<16x40xf32> to vector<16x32xf32>
    %19 = arith.addf %17, %18 : vector<16x32xf32>
    %cst_3 = arith.constant 0.000000e+00 : f32
    %20 = vector.broadcast %cst_3 : f32 to vector<16x32xf32>
    %21 = arith.maximumf %19, %20 : vector<16x32xf32>
    %22 = vector.extract_strided_slice %15 {offsets = [0, 32], sizes = [16, 8], strides = [1, 1]} : vector<16x40xf32> to vector<16x8xf32>
    %23 = vector.extract_strided_slice %16 {offsets = [0, 32], sizes = [16, 8], strides = [1, 1]} : vector<16x40xf32> to vector<16x8xf32>
    %24 = arith.mulf %22, %23 : vector<16x8xf32>
    %c0_4 = arith.constant 0 : index
    %c0_5 = arith.constant 0 : index
    %25 = vector.load %arg3[%c0_4, %c0_5] : memref<56x16xf32, #tpu.memory_space<vmem>>, vector<56x16xf32>
    %26 = vector.extract_strided_slice %25 {offsets = [0, 0], sizes = [32, 16], strides = [1, 1]} : vector<56x16xf32> to vector<32x16xf32>
    %27 = vector.extract_strided_slice %25 {offsets = [32, 0], sizes = [16, 8], strides = [1, 1]} : vector<56x16xf32> to vector<16x8xf32>
    %28 = vector.extract_strided_slice %25 {offsets = [48, 0], sizes = [1, 16], strides = [1, 1]} : vector<56x16xf32> to vector<1x16xf32>
    %29 = vector.extract_strided_slice %25 {offsets = [49, 0], sizes = [1, 8], strides = [1, 1]} : vector<56x16xf32> to vector<1x8xf32>
    %30 = vector.extract_strided_slice %25 {offsets = [50, 0], sizes = [1, 8], strides = [1, 1]} : vector<56x16xf32> to vector<1x8xf32>
    %31 = vector.extract_strided_slice %25 {offsets = [51, 0], sizes = [1, 8], strides = [1, 1]} : vector<56x16xf32> to vector<1x8xf32>
    %32 = vector.extract_strided_slice %25 {offsets = [52, 0], sizes = [1, 1], strides = [1, 1]} : vector<56x16xf32> to vector<1x1xf32>
    %cst_6 = arith.constant dense<0.000000e+00> : vector<16x16xf32>
    %33 = tpu.matmul %21, %26, %cst_6 {dimension_numbers = #tpu.dot_dimension_numbers<[1], [0], [0], [1], [0, 0, 1, 1], [], []>} : vector<16x32xf32>, vector<32x16xf32>, vector<16x16xf32> -> vector<16x16xf32>
    %34 = vector.broadcast %28 : vector<1x16xf32> to vector<16x16xf32>
    %35 = arith.addf %33, %34 : vector<16x16xf32>
    %cst_7 = arith.constant 0.000000e+00 : f32
    %36 = vector.broadcast %cst_7 : f32 to vector<16x16xf32>
    %37 = arith.maximumf %35, %36 : vector<16x16xf32>
    %cst_8 = arith.constant dense<0.000000e+00> : vector<16x8xf32>
    %38 = tpu.matmul %37, %27, %cst_8 {dimension_numbers = #tpu.dot_dimension_numbers<[1], [0], [0], [1], [0, 0, 1, 1], [], []>} : vector<16x16xf32>, vector<16x8xf32>, vector<16x8xf32> -> vector<16x8xf32>
    %39 = vector.broadcast %29 : vector<1x8xf32> to vector<16x8xf32>
    %40 = arith.addf %38, %39 : vector<16x8xf32>
    %cst_9 = arith.constant 0.000000e+00 : f32
    %41 = vector.broadcast %cst_9 : f32 to vector<16x8xf32>
    %42 = arith.maximumf %40, %41 : vector<16x8xf32>
    %43 = vector.broadcast %30 : vector<1x8xf32> to vector<16x8xf32>
    %44 = arith.mulf %42, %43 : vector<16x8xf32>
    %cst_10 = arith.constant dense<0.000000e+00> : vector<16xf32>
    %45 = vector.multi_reduction <add>, %44, %cst_10 [1] : vector<16x8xf32> to vector<16xf32>
    %46 = vector.shape_cast %45 : vector<16xf32> to vector<16x1xf32>
    %47 = vector.broadcast %31 : vector<1x8xf32> to vector<16x8xf32>
    %48 = arith.mulf %24, %47 : vector<16x8xf32>
    %cst_11 = arith.constant dense<0.000000e+00> : vector<16xf32>
    %49 = vector.multi_reduction <add>, %48, %cst_11 [1] : vector<16x8xf32> to vector<16xf32>
    %50 = vector.shape_cast %49 : vector<16xf32> to vector<16x1xf32>
    %51 = arith.addf %46, %50 : vector<16x1xf32>
    %52 = vector.broadcast %32 : vector<1x1xf32> to vector<16x1xf32>
    %53 = arith.addf %51, %52 : vector<16x1xf32>
    %54 = arith.negf %53 : vector<16x1xf32>
    %55 = math.exp %54 : vector<16x1xf32>
    %cst_12 = arith.constant 1.000000e+00 : f32
    %56 = vector.broadcast %cst_12 : f32 to vector<16x1xf32>
    %57 = arith.addf %56, %55 : vector<16x1xf32>
    %58 = arith.divf %56, %57 : vector<16x1xf32>
    %c0_13 = arith.constant 0 : index
    %c0_14 = arith.constant 0 : index
    %59 = vector.load %arg4[%c0_13, %c0_14] : memref<16x1xf32, #tpu.memory_space<vmem>>, vector<16x1xf32>
    tpu.vector_store %arg4[%c0_13, %c0_14], %58 {strides = array<i32>} : memref<16x1xf32, #tpu.memory_space<vmem>>, vector<16x1xf32>,
    return
  }
  func.func @transform_0(%arg0: i32) -> (i32, i32) {
    %c0_i32 = arith.constant 0 : i32
    %c0_i32_0 = arith.constant 0 : i32
    return %arg0, %c0_i32 : i32, i32
  }
  func.func @transform_1(%arg0: i32) -> (i32, i32) {
    %c0_i32 = arith.constant 0 : i32
    %c0_i32_0 = arith.constant 0 : i32
    %c0_i32_1 = arith.constant 0 : i32
    return %c0_i32, %c0_i32_0 : i32, i32
  }
  func.func @transform_2(%arg0: i32) -> (i32, i32) {
    %c0_i32 = arith.constant 0 : i32
    %c0_i32_0 = arith.constant 0 : i32
    %c0_i32_1 = arith.constant 0 : i32
    return %c0_i32, %c0_i32_0 : i32, i32
  }
  func.func @transform_3(%arg0: i32) -> (i32, i32) {
    %c0_i32 = arith.constant 0 : i32
    %c0_i32_0 = arith.constant 0 : i32
    return %arg0, %c0_i32 : i32, i32
  }
}

</mosaic_0001>

<bundles_post_ra>
// kernel: neumf_forward.1
= control target key start
LH: loop header
LB: loop body
LE: loop exit
PB: predicated region body
PF: predicated region fallthrough
CT: control target
= control target key end

     0   :  { %v509_v0 = vmov 1   ;;  %v510_v1 = vmov 0   ;;  %v16_v5 = vlaneseq  ;;  %s511_s29 = smov 32   ;;  %vm54_vm0 = vcmask 785408   ;;  %s513_s22 = smov 96   ;;  %s617_s0 = inlined_call_operand.vmem [shape: s32[16,2], index: 0, kind: input, shape index: {}]   ;;  %s618_s1 = inlined_call_operand.vmem [shape: f32[96,40], index: 1, kind: input, shape index: {}]   ;;  %s619_s2 = inlined_call_operand.vmem [shape: f32[56,16], index: 2, kind: input, shape index: {}]   ;;  %s620_s3 = inlined_call_operand.vmem [shape: f32[16,1], index: 3, kind: output, shape index: {}]  }
   0x1   :  { %499 = vset.pattern.permute.xlu1 %v509_v0  ;;  %498 = vset.pattern.permute.xlu0 %v510_v1  ;;  %v14_v2 = vld [vmem:[%s617_s0] sm:$0xff]  ;;  %v53_v3 = vld [vmem:[%s618_s1 + $0x58] sm:$0xff]  ;;  %v52_v4 = vld [vmem:[%s618_s1 + $0x50] sm:$0xff]  ;;  %v512_v24 = vmov 0.0   ;;  %vm169_vm5 = vcmask 261120   ;;  %vm257_vm6 = vcmask 130048  }
   0x2   :  { %31 = vperm.xlu1 %499, %v14_v2   ;;  %19 = vperm.xlu0 %498, %v14_v2   ;;  %v15_v6 = vld [vmem:[%s617_s0 + $0x8] sm:$0xff]  ;;  %v546_v7 = vshrl.u32 %v16_v5, 7  ;;  %v50_v9 = vld [vmem:[%s618_s1 + $0x40] sm:$0xff]  ;;  %v49_v11 = vld [vmem:[%s618_s1 + $0x38] sm:$0xff]  ;;  %v17_v21 = vand.u32 127, %v16_v5  ;;  %vm347_vm7 = vcmask 64512  }
   0x3   :  { %445 = vmatprep.subr.mxu0 %v53_v3  ;;  %v51_v8 = vld [vmem:[%s618_s1 + $0x48] sm:$0xff]  ;;  %v561_v12 = vld [vmem:[%s619_s2 + $0x30] sm:$0xff]  ;;  %v46_v16 = vld [vmem:[%s618_s1 + $0x20] sm:$0xff]  ;;  %vm398_vm8 = vcmask 7168  }
   0x4   :  { %446 = vmatpush3.msra.mxu0 %v53_v3  ;;  %v356_v10 = vsub.s32 3, %v546_v7  ;;  %v48_v14 = vld [vmem:[%s618_s1 + $0x30] sm:$0xff]  ;;  %v47_v15 = vld [vmem:[%s618_s1 + $0x28] sm:$0xff]  ;;  %v45_v17 = vld [vmem:[%s618_s1 + $0x18] sm:$0xff]  ;;  %v167_v50 = vsub.s32 0, %v546_v7  ;;  %v255_v58 = vsub.s32 1, %v546_v7 }
   0x5   :  { %447 = vmatprep.subr.mxu0 %v52_v4  ;;  %v44_v18 = vld [vmem:[%s618_s1 + $0x10] sm:$0xff]  ;;  %v43_v19 = vld [vmem:[%s618_s1 + $0x8] sm:$0xff]  ;;  %v42_v20 = vld [vmem:[%s618_s1] sm:$0xff]  ;;  %v343_v60 = vsub.s32 2, %v546_v7 }
   0x6   :  { %34 = vperm.xlu1 %499, %v15_v6   ;;  %22 = vperm.xlu0 %498, %v15_v6   ;;  %v357_v13 = vrot.slane %v561_v12, %v356_v10  ;;  %v161_v31 = vld [vmem:[%s619_s2 + $0x18] sm:$0xff]  ;;  %v160_v32 = vld [vmem:[%s619_s2 + $0x10] sm:$0xff]  ;;  %v159_v33 = vld [vmem:[%s619_s2 + $0x8] sm:$0xff]  ;;  %v168_v51 = vrot.slane %v561_v12, %v167_v50  ;;  %v256_v59 = vrot.slane %v561_v12, %v255_v58 }
   0x7   :  { %448 = vmatpush3.msra.mxu0 %v52_v4  ;;  %475 = vmatprep.subr.mxu1 %v161_v31  ;;  %v158_v34 = vld [vmem:[%s619_s2] sm:$0xff]  ;;  %v163_v48 = vld [vmem:[%s619_s2 + $0x28] sm:$0xff]  ;;  %v344_v63 = vrot.slane %v561_v12, %v343_v60 }
   0x8   :  { %449 = vmatprep.subr.mxu0 %v51_v8  ;;  %476 = vmatpush3.msra.mxu1 %v161_v31  ;;  %v162_v49 = vld [vmem:[%s619_s2 + $0x20] sm:$0xff] }
   0x9   :  { %450 = vmatpush3.msra.mxu0 %v51_v8  ;;  %477 = vmatprep.subr.mxu1 %v160_v32 }
   0xa   :  { %451 = vmatprep.subr.mxu0 %v50_v9  ;;  %500 = vset.pattern.permute.xlu0 %v509_v0 }
   0xb   :  { %452 = vmatpush3.msra.mxu0 %v50_v9  ;;  %359 = vrot.lane.b32.xlu0 %v357_v13, %s511_s29 }
   0xc   :  { %453 = vmatprep.subr.mxu0 %v49_v11  ;;  %478 = vmatpush3.msra.mxu1 %v160_v32 }
   0xd   :  { %454 = vmatpush3.msra.mxu0 %v49_v11  ;;  %479 = vmatprep.subr.mxu1 %v159_v33 }
   0xe   :  { %455 = vmatprep.subr.mxu0 %v48_v14  ;;  %480 = vmatpush3.msra.mxu1 %v159_v33 }
   0xf   :  { %456 = vmatpush3.msra.mxu0 %v48_v14  ;;  %481 = vmatprep.subr.mxu1 %v158_v34  ;;  %v382_v14 = vsub.s32 4, %v546_v7 }
  0x10   :  { %457 = vmatprep.subr.mxu0 %v47_v15  ;;  %482 = vmatpush3.msra.mxu1 %v158_v34 }
  0x11   :  { %458 = vmatpush3.msra.mxu0 %v47_v15  ;;  %486 = vmatprep.subr.mxu1 %v163_v48 }
  0x12   :  { %459 = vmatprep.subr.mxu0 %v46_v16 }
  0x13   :  { %460 = vmatpush3.msra.mxu0 %v46_v16 }
  0x14   :  { %461 = vmatprep.subr.mxu0 %v45_v17 }
  0x15   :  { %462 = vmatpush3.msra.mxu0 %v45_v17  ;;  %v383_v17 = vrot.slane %v561_v12, %v382_v14 }
  0x16   :  { %463 = vmatprep.subr.mxu0 %v44_v18 }
  0x17   :  { %464 = vmatpush3.msra.mxu0 %v44_v18 }
  0x18   :  { %465 = vmatprep.subr.mxu0 %v43_v19 }
  0x19   :  { %466 = vmatpush3.msra.mxu0 %v43_v19 }
  0x1a   :  { %467 = vmatprep.subr.mxu0 %v42_v20 }
  0x1b   :  { %468 = vmatpush3.msra.mxu0 %v42_v20 }
  0x7d   :  { %v32_v22 = vpop.permute.xlu1 %31  ;;  %v20_v23 = vpop.permute.xlu0 %19 }
  0x7e   :  { %vm24_vm1 = vcmp.eq.s32.totalorder %v17_v21, %v20_v23  ;;  %vm36_vm2 = vcmp.eq.s32.totalorder %v17_v21, %v32_v22 }
  0x7f   :  { %v405_v25 = vsel %vm24_vm1, 1.0, %v512_v24  ;;  %v407_v28 = vsel %vm36_vm2, 1.0, %v512_v24 }
  0x80   :  { %469 = vmatprep.mubr.msk.f32.mxu0 %vm54_vm0, %v405_v25 }
  0x81   :  { %v35_v26 = vpop.permute.xlu1 %34  ;;  %v23_v27 = vpop.permute.xlu0 %22 }
  0x82   :  { %vm25_vm3 = vcmp.eq.s32.totalorder %v17_v21, %v23_v27  ;;  %vm37_vm4 = vcmp.eq.s32.totalorder %v17_v21, %v35_v26 }
  0x83   :  { %v406_v29 = vsel %vm25_vm3, 1.0, %v512_v24  ;;  %v408_v30 = vsel %vm37_vm4, 1.0, %v512_v24 }
  0x84   :  { %470 = vmatmul.mubr.msk.f32.vlgmr.msra.gmra.mxu0 %vm54_vm0, %v406_v29 }
  0x85   :  { %472 = vmatprep.mubr.msk.f32.mxu0 %vm54_vm0, %v407_v28  ;;  %v360_v38 = vpop.permute.xlu0 %359 }
  0x88   :  { %473 = vmatmul.mubr.msk.f32.gmra.mxu0 %vm54_vm0, %v408_v30 }
 0x144   :  { %v471_v35 = vpop.f32.mrf.mxu0 }
 0x146   :  { %v133_v36 = vpop.f32.mrf.mxu0 }
 0x148   :  { %v474_v37 = vpop.f32.mrf.mxu0 }
 0x149   :  { %v157_v39 = vmul.f32 %v474_v37, %v471_v35  ;;  %v153_v40 = vadd.f32 %v474_v37, %v471_v35 }
 0x14a   :  { %v143_v41 = vpop.f32.mrf.mxu0 }
 0x14b   :  { %v152_v42 = vadd.f32 %v143_v41, %v133_v36  ;;  %v156_v43 = vmul.f32 %v143_v41, %v133_v36  ;;  %v363_v44 = vmul.f32 %v360_v38, %v157_v39  ;;  %v155_v47 = vmax.f32 %v153_v40, 0.0 }
 0x14d   :  { %v154_v45 = vmax.f32 %v152_v42, 0.0  ;;  %v362_v46 = vmul.f32 %v360_v38, %v156_v43  ;;  %368 = vrot.lane.b32.xlu0 %v363_v44, %s513_s22 }
 0x14f   :  { %483 = vmatprep.mubr.msk.f32.mxu1 %vm169_vm5, %v154_v45  ;;  %366 = vrot.lane.b32.xlu1 %v362_v46, %s513_s22 }
 0x150   :  { %484 = vmatmul.mubr.msk.f32.vlgmr.msra.gmra.mxu1 %vm169_vm5, %v155_v47 }
 0x151   :  { %487 = vmatpush3.msra.mxu1 %v163_v48 }
 0x152   :  { %488 = vmatprep.subr.mxu1 %v162_v49 }
 0x153   :  { %489 = vmatpush3.msra.mxu1 %v162_v49 }
 0x1bf   :  { %v369_v10 = vpop.permute.xlu0 %368 }
 0x1c0   :  { %v375_v13 = vsel %vm347_vm7, %v369_v10, 0.0 }
 0x1c1   :  { %v367_v8 = vpop.permute.xlu1 %366 }
 0x1c2   :  { %v372_v11 = vsel %vm347_vm7, %v367_v8, 0.0 }
 0x210   :  { %v485_v52 = vpop.f32.mrf.mxu1 }
 0x211   :  { %v248_v53 = vadd.f32 %v485_v52, %v168_v51 }
 0x212   :  { %v242_v54 = vpop.f32.mrf.mxu1 }
 0x213   :  { %v243_v55 = vadd.f32 %v242_v54, %v168_v51  ;;  %v252_v57 = vmax.f32 %v248_v53, 0.0 }
 0x215   :  { %v251_v56 = vmax.f32 %v243_v55, 0.0 }
 0x217   :  { %490 = vmatprep.mubr.msk.f32.mxu1 %vm257_vm6, %v251_v56 }
 0x218   :  { %491 = vmatmul.mubr.msk.f32.vlgmr.msra.gmra.mxu1 %vm257_vm6, %v252_v57 }
 0x2d8   :  { %v492_v61 = vpop.f32.mrf.mxu1 }
 0x2d9   :  { %v336_v62 = vadd.f32 %v492_v61, %v256_v59 }
 0x2da   :  { %v330_v0 = vpop.f32.mrf.mxu1 }
 0x2db   :  { %v340_v1 = vmax.f32 %v336_v62, 0.0  ;;  %v331_v2 = vadd.f32 %v330_v0, %v256_v59 }
 0x2dd   :  { %v339_v3 = vmax.f32 %v331_v2, 0.0  ;;  %v346_v4 = vmul.f32 %v344_v63, %v340_v1 }
 0x2df   :  { %v351_v5 = vsel %vm347_vm7, %v346_v4, 0.0  ;;  %v345_v6 = vmul.f32 %v344_v63, %v339_v3 }
 0x2e0   :  { %352 = vadd.xlane.f32.xlu0 %v351_v5 }
 0x2e1   :  { %v348_v9 = vsel %vm347_vm7, %v345_v6, 0.0 }
 0x2e2   :  { %349 = vadd.xlane.f32.xlu1 %v348_v9 }
 0x2e4   :  { %373 = vadd.xlane.f32.xlu0 %v372_v11 }
 0x2e6   :  { %376 = vadd.xlane.f32.xlu1 %v375_v13 }
 0x369   :  { %v353_v15 = vpop.xlane.xlu0 %352 }
 0x36b   :  { %v350_v16 = vpop.xlane.xlu1 %349 }
 0x36d   :  { %v374_v18 = vpop.xlane.xlu0 %373 }
 0x36e   :  { %v378_v19 = vadd.f32 %v374_v18, %v350_v16 }
 0x36f   :  { %v377_v20 = vpop.xlane.xlu1 %376 }
 0x370   :  { %v384_v21 = vadd.f32 %v383_v17, %v378_v19  ;;  %v379_v22 = vadd.f32 %v377_v20, %v353_v15 }
 0x372   :  { %v417_v23 = vmul.f32 -1.442695, %v384_v21  ;;  %v385_v24 = vadd.f32 %v383_v17, %v379_v22 }
 0x374   :  { %501 = vpow2.f32 %v417_v23  ;;  %v418_v25 = vmul.f32 -1.442695, %v385_v24 }
 0x376   :  { %503 = vpow2.f32 %v418_v25 }
 0x381   :  { %v502_v26 = vpop.eup %501 }
 0x382   :  { %v392_v27 = vadd.f32 1.0, %v502_v26 }
 0x383   :  { %v504_v28 = vpop.eup %503 }
 0x384   :  { %505 = vrcp.f32 %v392_v27  ;;  %v393_v29 = vadd.f32 1.0, %v504_v28 }
 0x386   :  { %507 = vrcp.f32 %v393_v29 }
 0x391   :  { %v506_v7 = vpop.eup %505 }
 0x392   :  { %399 = vst.msk [vmem:[%s620_s3] sm:$0xff] %vm398_vm8, %v506_v7 }
 0x393   :  { %v508_v12 = vpop.eup %507 }
 0x394   :  { %400 = vst.msk [vmem:[%s620_s3 + $0x8] sm:$0xff] %vm398_vm8, %v508_v12 }

</bundles_post_ra>
